<compile_context>
chip_gen: v5e
topology: v5e:2x2
jax: 0.10.0
libtpu: 0.0.40
codegen_flags: <defaults>
</compile_context>

<pallas_src>
import functools

import jax
import jax.numpy as jnp
from jax import lax
from jax.experimental import pallas as pl
from jax.experimental.pallas import tpu as pltpu

MATMUL_DTYPE = jnp.bfloat16     # MXU operand dtype (accumulation stays f32)

OUT_ROWS = 8                    # output slab sublane rows (value/alp/ent/action + pad)
_VALUE_ROW = 0
_ALP_ROW = 1
_ENT_ROW = 2
_ACTION_ROW = 3
_NEG_BIG = -1e30                # finite mask value for non-logit head rows


def _round_up(x, m):
    return ((x + m - 1) // m) * m


def _agent_act_kernel(num_actions, x_ref, w1_ref, w2_ref, w3t_ref, b12_ref,
                      bh_ref, out_ref):
    """One batch tile: fused actor/critic trunks + transposed head + categorical stats."""
    md = MATMUL_DTYPE
    head_rows = w3t_ref.shape[0]

    b1 = b12_ref[0:1, :]                       # [1, 2H]
    b2 = b12_ref[1:2, :]                       # [1, 2H]
    bh = bh_ref[...]                           # [head_rows, 1]

    x = x_ref[...].astype(md)                  # [tb, obs]

    # Fused trunk layer 1: [tb, 2H] = [ actor_h1 | critic_h1 ]
    h1 = jnp.tanh(
        jnp.dot(x, w1_ref[...], preferred_element_type=jnp.float32) + b1)
    # Fused trunk layer 2 (block-diagonal weight keeps the halves independent).
    h2 = jnp.tanh(
        jnp.dot(h1.astype(md), w2_ref[...], preferred_element_type=jnp.float32) + b2)

    # Transposed head: headT[r, b] = sum_h w3t[r, h] * h2[b, h]  (rhs-transposed
    # dot -> output already batch-on-lanes).  Row 0 = value, rows 1..A = logits.
    headT = lax.dot_general(
        w3t_ref[...], h2.astype(md),
        dimension_numbers=(((1,), (1,)), ((), ())),
        preferred_element_type=jnp.float32,
    ) + bh                                      # [head_rows, tb]

    row = jax.lax.broadcasted_iota(jnp.int32, headT.shape, 0)    # sublane index
    is_logit = jnp.logical_and(row >= 1, row <= num_actions)
    # Mask value/pad rows with a large FINITE negative (not -inf: keeps p*log_p
    # exactly 0, no NaN) so all reductions run over the full sublane tile.
    logitsT = jnp.where(is_logit, headT, _NEG_BIG)               # [head_rows, tb]

    # Numerically stable log-softmax pieces (sublane reductions -> [1, tb] rows).
    m = jnp.max(logitsT, axis=0, keepdims=True)                  # [1, tb]
    z = logitsT - m
    p_un = jnp.exp(z)                                            # masked rows -> 0
    sum_e = jnp.sum(p_un, axis=0, keepdims=True)                 # [1, tb]
    lse = jnp.log(sum_e)                                         # [1, tb]

    value_row = headT[0:1, :]                                    # [1, tb]
    # log_probs(action): action is the argmax so z[action] == 0 -> log_p = -lse.
    alp_row = -lse
    # entropy = lse - sum_a(p_un * z) / sum_e   (p*log_p folded; masked rows add 0)
    ent_row = lse - jnp.sum(p_un * z, axis=0, keepdims=True) / sum_e

    # mode() = argmax(logits, -1); ties -> smallest index.  Logit index = row - 1.
    is_max = logitsT >= m
    rowf = row.astype(jnp.float32)
    act_row = jnp.min(jnp.where(is_max, rowf - 1.0, float(head_rows)),
                      axis=0, keepdims=True)                     # [1, tb], exact ints

    # Pack the four result rows into the lane-dense (OUT_ROWS, tb) output block
    # with a single nested select chain on one sublane iota.
    orow = jax.lax.broadcasted_iota(jnp.int32, out_ref.shape, 0)
    out_ref[...] = jnp.where(
        orow == _VALUE_ROW, value_row,
        jnp.where(orow == _ALP_ROW, alp_row,
                  jnp.where(orow == _ENT_ROW, ent_row,
                            jnp.where(orow == _ACTION_ROW, act_row, 0.0))))


def init_params(key, obs_dim, hidden, num_actions):
    """Unfused per-layer params, mirroring the PyTorch module ([in, out] weights)."""
    ks = jax.random.split(key, 6)
    scale = 0.1
    f32 = jnp.float32
    return dict(
        wa1=scale * jax.random.normal(ks[0], (obs_dim, hidden), f32),
        ba1=jnp.zeros((1, hidden), f32),
        wa2=scale * jax.random.normal(ks[1], (hidden, hidden), f32),
        ba2=jnp.zeros((1, hidden), f32),
        wc1=scale * jax.random.normal(ks[2], (obs_dim, hidden), f32),
        bc1=jnp.zeros((1, hidden), f32),
        wc2=scale * jax.random.normal(ks[3], (hidden, hidden), f32),
        bc2=jnp.zeros((1, hidden), f32),
        wv=scale * jax.random.normal(ks[4], (hidden, 1), f32),
        bv=jnp.zeros((1, 1), f32),
        wd=scale * jax.random.normal(ks[5], (hidden, num_actions), f32),
        bd=jnp.zeros((1, num_actions), f32),
    )


def fuse_params(p, matmul_dtype=MATMUL_DTYPE):
    """Pack the 12 per-layer tensors into 3 fused weights + 2 bias buffers."""
    hidden = p["wa1"].shape[1]
    num_actions = p["wd"].shape[1]
    two_h = 2 * hidden
    head_rows = _round_up(num_actions + 1, 8)   # row 0 = value, rows 1..A = logits
    f32 = jnp.float32

    w1 = jnp.concatenate([p["wa1"], p["wc1"]], axis=1)             # [obs, 2H]

    w2 = jnp.zeros((two_h, two_h), f32)
    w2 = w2.at[:hidden, :hidden].set(p["wa2"])
    w2 = w2.at[hidden:, hidden:].set(p["wc2"])                      # block-diag

    # Transposed, padded head weight: [head_rows, 2H].
    w3t = jnp.zeros((head_rows, two_h), f32)
    w3t = w3t.at[0, hidden:].set(p["wv"][:, 0])                     # value <- critic half
    w3t = w3t.at[1:1 + num_actions, :hidden].set(p["wd"].T)         # logits <- actor half

    b12 = jnp.stack([
        jnp.concatenate([p["ba1"][0], p["bc1"][0]]),
        jnp.concatenate([p["ba2"][0], p["bc2"][0]]),
    ]).astype(f32)                                                  # [2, 2H]

    bh = jnp.zeros((head_rows, 1), f32)                             # head bias column
    bh = bh.at[0, 0].set(p["bv"][0, 0])
    bh = bh.at[1:1 + num_actions, 0].set(p["bd"][0])

    return dict(
        w1=w1.astype(matmul_dtype),
        w2=w2.astype(matmul_dtype),
        w3t=w3t.astype(matmul_dtype),
        b12=b12,      # biases stay f32 (added after the f32-accumulated dots)
        bh=bh,
        num_actions=num_actions,
    )


def policy_gradient_agent_act(inputs, rnn_hxs, masks, fused, *, tile_b=2048):
    """Equivalent of PolicyGradientAgent.act(..., deterministic=True)."""
    del masks  # non-recurrent MLPBase ignores masks
    B, obs_dim = inputs.shape
    two_h = fused["w1"].shape[1]
    head_rows = fused["w3t"].shape[0]
    num_actions = int(fused["num_actions"])

    # Batch tile: multiple of 128 so all stores stay lane-dense/unmasked, at
    # least 2 blocks whenever B > 128 (v7x has 2 TensorCores), capped at tile_b.
    # tile_b=2048 keeps the f32 activations well inside even v7x's 64 MiB VMEM
    # (~2.5 KB/row); stay <= 4096 on v7x, sweep 1024-4096 on v5e/v6e.
    tile_b = max(128, _round_up(tile_b, 128))
    if B <= 128:
        tb = B                                    # single block, full batch
    else:
        tb = min(tile_b, _round_up(-(-B // 2), 128))
    grid = (pl.cdiv(B, tb),)

    kernel = functools.partial(_agent_act_kernel, num_actions)

    out = pl.pallas_call(
        kernel,
        out_shape=jax.ShapeDtypeStruct((OUT_ROWS, B), jnp.float32),
        grid=grid,
        in_specs=[
            pl.BlockSpec((tb, obs_dim), lambda i: (i, 0)),        # x: tiled over B
            pl.BlockSpec((obs_dim, two_h), lambda i: (0, 0)),     # fused W1 (resident)
            pl.BlockSpec((two_h, two_h), lambda i: (0, 0)),       # fused W2 (resident)
            pl.BlockSpec((head_rows, two_h), lambda i: (0, 0)),   # fused transposed head
            pl.BlockSpec((2, two_h), lambda i: (0, 0)),           # b1|b2 rows
            pl.BlockSpec((head_rows, 1), lambda i: (0, 0)),       # head bias column
        ],
        out_specs=pl.BlockSpec((OUT_ROWS, tb), lambda i: (0, i)), # transposed, lane-dense
        compiler_params=pltpu.CompilerParams(
            dimension_semantics=("parallel",),                    # shards across TCs (v7x)
        ),
    )(inputs, fused["w1"], fused["w2"], fused["w3t"], fused["b12"], fused["bh"])

    value = out[_VALUE_ROW, :].reshape(B, 1)
    action_log_probs = out[_ALP_ROW, :].reshape(B, 1)
    dist_entropy = jnp.mean(out[_ENT_ROW, :])                     # batch mean in wrapper
    # Action rides an f32 lane: exact while num_actions < 2**24.
    action = out[_ACTION_ROW, :].astype(jnp.int32).reshape(B, 1)
    return value, action, action_log_probs, dist_entropy, rnn_hxs


def _reference_act(inputs, p, matmul_dtype=MATMUL_DTYPE):
    """Pure-JAX reference on the UNFUSED params (same bf16 matmul operands)."""
    md = matmul_dtype

    def lin(a, w, b):
        return (
            jnp.dot(a.astype(md), w.astype(md), preferred_element_type=jnp.float32) + b
        )

    ha = jnp.tanh(lin(inputs, p["wa1"], p["ba1"]))
    ha = jnp.tanh(lin(ha, p["wa2"], p["ba2"]))
    hc = jnp.tanh(lin(inputs, p["wc1"], p["bc1"]))
    hc = jnp.tanh(lin(hc, p["wc2"], p["bc2"]))
    value = lin(hc, p["wv"], p["bv"])
    logits = lin(ha, p["wd"], p["bd"])
    log_p = jax.nn.log_softmax(logits, axis=-1)
    pr = jnp.exp(log_p)
    action = jnp.argmax(logits, axis=-1, keepdims=True).astype(jnp.int32)
    alp = jnp.take_along_axis(log_p, action, axis=-1)
    ent = jnp.mean(-jnp.sum(pr * log_p, axis=-1))
    return value, action, alp, ent


if __name__ == "__main__":
    B, OBS_DIM, HIDDEN, NUM_ACTIONS = 8, 32, 64, 6   # 2*HIDDEN = 128 -> full lane width

    key = jax.random.PRNGKey(0)
    k_params, k_x, k_x2 = jax.random.split(key, 3)
    params = init_params(k_params, OBS_DIM, HIDDEN, NUM_ACTIONS)
    fused = fuse_params(params)

    def check(x):
        bsz = x.shape[0]
        rnn_hxs = jnp.zeros((bsz, 1), jnp.float32)      # non-recurrent: size 1
        masks = jnp.ones((bsz, 1), jnp.float32)
        value, action, alp, ent, rnn_out = policy_gradient_agent_act(
            x, rnn_hxs, masks, fused)
        jax.block_until_ready((value, action, alp, ent, rnn_out))
        v_ref, a_ref, alp_ref, ent_ref = _reference_act(x, params)
        assert value.shape == (bsz, 1) and action.shape == (bsz, 1)
        assert jnp.allclose(value, v_ref, atol=1e-3, rtol=1e-3), "value mismatch"
        assert jnp.array_equal(action, a_ref), "action mismatch"
        assert jnp.allclose(alp, alp_ref, atol=1e-3, rtol=1e-3), "log_prob mismatch"
        assert jnp.allclose(ent, ent_ref, atol=1e-3, rtol=1e-3), "entropy mismatch"

    # Small single-block case (grid=(1,), tb=B).
    check(jax.random.normal(k_x, (B, OBS_DIM), jnp.float32))
    # Multi-block case (grid=(2,), tb=256) to exercise the batch tiling / megacore split.
    check(jax.random.normal(k_x2, (512, OBS_DIM), jnp.float32))

    print("KERNEL_OK")
</pallas_src>

<mosaic_0001>
module attributes {stable_mosaic.version = 11 : i64} {
  func.func @_agent_act_kernel(%arg0: i32, %arg1: memref<8x32xf32, #tpu.memory_space<vmem>>, %arg2: memref<32x128xbf16, #tpu.memory_space<vmem>>, %arg3: memref<128x128xbf16, #tpu.memory_space<vmem>>, %arg4: memref<8x128xbf16, #tpu.memory_space<vmem>>, %arg5: memref<2x128xf32, #tpu.memory_space<vmem>>, %arg6: memref<8x1xf32, #tpu.memory_space<vmem>>, %arg7: memref<8x8xf32, #tpu.memory_space<vmem>>) attributes {dimension_semantics = [#tpu.dimension_semantics<parallel>], iteration_bounds = array<i64: 1>, scalar_prefetch = 0 : i64, scratch_operands = 0 : i64, tpu.core_type = #tpu.core_type<tc>, window_params = [{transform_indices = @transform_0, window_bounds = array<i64: 8, 32>}, {pipeline_mode = #tpu.pipeline_mode<synchronous>, transform_indices = @transform_1, window_bounds = array<i64: 32, 128>}, {pipeline_mode = #tpu.pipeline_mode<synchronous>, transform_indices = @transform_2, window_bounds = array<i64: 128, 128>}, {pipeline_mode = #tpu.pipeline_mode<synchronous>, transform_indices = @transform_3, window_bounds = array<i64: 8, 128>}, {pipeline_mode = #tpu.pipeline_mode<synchronous>, transform_indices = @transform_4, window_bounds = array<i64: 2, 128>}, {pipeline_mode = #tpu.pipeline_mode<synchronous>, transform_indices = @transform_5, window_bounds = array<i64: 8, 1>}, {transform_indices = @transform_6, window_bounds = array<i64: 8, 8>}]} {
    %c0 = arith.constant 0 : index
    %c0_0 = arith.constant 0 : index
    %0 = vector.load %arg5[%c0, %c0_0] : memref<2x128xf32, #tpu.memory_space<vmem>>, vector<1x128xf32>
    %c1 = arith.constant 1 : index
    %c0_1 = arith.constant 0 : index
    %1 = vector.load %arg5[%c1, %c0_1] : memref<2x128xf32, #tpu.memory_space<vmem>>, vector<1x128xf32>
    %c0_2 = arith.constant 0 : index
    %c0_3 = arith.constant 0 : index
    %2 = vector.load %arg6[%c0_2, %c0_3] : memref<8x1xf32, #tpu.memory_space<vmem>>, vector<8x1xf32>
    %c0_4 = arith.constant 0 : index
    %c0_5 = arith.constant 0 : index
    %3 = vector.load %arg1[%c0_4, %c0_5] : memref<8x32xf32, #tpu.memory_space<vmem>>, vector<8x32xf32>
    %4 = arith.truncf %3 : vector<8x32xf32> to vector<8x32xbf16>
    %c0_6 = arith.constant 0 : index
    %c0_7 = arith.constant 0 : index
    %5 = vector.load %arg2[%c0_6, %c0_7] : memref<32x128xbf16, #tpu.memory_space<vmem>>, vector<32x128xbf16>
    %cst = arith.constant dense<0.000000e+00> : vector<8x128xf32>
    %6 = tpu.matmul %4, %5, %cst {dimension_numbers = #tpu.dot_dimension_numbers<[1], [0], [0], [1], [0, 0, 1, 1], [], []>} : vector<8x32xbf16>, vector<32x128xbf16>, vector<8x128xf32> -> vector<8x128xf32>
    %7 = vector.broadcast %0 : vector<1x128xf32> to vector<8x128xf32>
    %8 = arith.addf %6, %7 : vector<8x128xf32>
    %9 = math.tanh %8 : vector<8x128xf32>
    %10 = arith.truncf %9 : vector<8x128xf32> to vector<8x128xbf16>
    %c0_8 = arith.constant 0 : index
    %c0_9 = arith.constant 0 : index
    %11 = vector.load %arg3[%c0_8, %c0_9] : memref<128x128xbf16, #tpu.memory_space<vmem>>, vector<128x128xbf16>
    %cst_10 = arith.constant dense<0.000000e+00> : vector<8x128xf32>
    %12 = tpu.matmul %10, %11, %cst_10 {dimension_numbers = #tpu.dot_dimension_numbers<[1], [0], [0], [1], [0, 0, 1, 1], [], []>} : vector<8x128xbf16>, vector<128x128xbf16>, vector<8x128xf32> -> vector<8x128xf32>
    %13 = vector.broadcast %1 : vector<1x128xf32> to vector<8x128xf32>
    %14 = arith.addf %12, %13 : vector<8x128xf32>
    %15 = math.tanh %14 : vector<8x128xf32>
    %c0_11 = arith.constant 0 : index
    %c0_12 = arith.constant 0 : index
    %16 = vector.load %arg4[%c0_11, %c0_12] : memref<8x128xbf16, #tpu.memory_space<vmem>>, vector<8x128xbf16>
    %17 = arith.truncf %15 : vector<8x128xf32> to vector<8x128xbf16>
    %cst_13 = arith.constant dense<0.000000e+00> : vector<8x8xf32>
    %18 = tpu.matmul %16, %17, %cst_13 {dimension_numbers = #tpu.dot_dimension_numbers<[1], [1], [0], [0], [0, 0, 1, 0], [], []>} : vector<8x128xbf16>, vector<8x128xbf16>, vector<8x8xf32> -> vector<8x8xf32>
    %19 = vector.broadcast %2 : vector<8x1xf32> to vector<8x8xf32>
    %20 = arith.addf %18, %19 : vector<8x8xf32>
    %21 = tpu.iota {dimensions = array<i32: 0>} : vector<8x8xi32>
    %c1_i32 = arith.constant 1 : i32
    %22 = vector.broadcast %c1_i32 : i32 to vector<8x8xi32>
    %23 = arith.cmpi sge, %21, %22 : vector<8x8xi32>
    %c6_i32 = arith.constant 6 : i32
    %24 = vector.broadcast %c6_i32 : i32 to vector<8x8xi32>
    %25 = arith.cmpi sle, %21, %24 : vector<8x8xi32>
    %26 = arith.andi %23, %25 : vector<8x8xi1>
    %cst_14 = arith.constant -1.000000e+30 : f32
    %27 = vector.broadcast %cst_14 : f32 to vector<8x8xf32>
    %28 = arith.select %26, %20, %27 : vector<8x8xi1>, vector<8x8xf32>
    %cst_15 = arith.constant dense<0xFF800000> : vector<8xf32>
    %29 = vector.multi_reduction <maximumf>, %28, %cst_15 [0] : vector<8x8xf32> to vector<8xf32>
    %30 = vector.shape_cast %29 : vector<8xf32> to vector<1x8xf32>
    %31 = vector.broadcast %30 : vector<1x8xf32> to vector<8x8xf32>
    %32 = arith.subf %28, %31 : vector<8x8xf32>
    %33 = math.exp %32 : vector<8x8xf32>
    %cst_16 = arith.constant dense<0.000000e+00> : vector<8xf32>
    %34 = vector.multi_reduction <add>, %33, %cst_16 [0] : vector<8x8xf32> to vector<8xf32>
    %35 = vector.shape_cast %34 : vector<8xf32> to vector<1x8xf32>
    %36 = math.log %35 : vector<1x8xf32>
    %37 = vector.extract_strided_slice %20 {offsets = [0, 0], sizes = [1, 8], strides = [1, 1]} : vector<8x8xf32> to vector<1x8xf32>
    %cst_17 = arith.constant 0.000000e+00 : f32
    %38 = vector.broadcast %cst_17 : f32 to vector<1x8xf32>
    %39 = arith.subf %38, %36 : vector<1x8xf32>
    %40 = arith.mulf %33, %32 : vector<8x8xf32>
    %cst_18 = arith.constant dense<0.000000e+00> : vector<8xf32>
    %41 = vector.multi_reduction <add>, %40, %cst_18 [0] : vector<8x8xf32> to vector<8xf32>
    %42 = vector.shape_cast %41 : vector<8xf32> to vector<1x8xf32>
    %43 = arith.divf %42, %35 : vector<1x8xf32>
    %44 = arith.subf %36, %43 : vector<1x8xf32>
    %45 = vector.broadcast %30 : vector<1x8xf32> to vector<8x8xf32>
    %46 = arith.cmpf oge, %28, %45 : vector<8x8xf32>
    %47 = arith.sitofp %21 : vector<8x8xi32> to vector<8x8xf32>
    %cst_19 = arith.constant 1.000000e+00 : f32
    %48 = vector.broadcast %cst_19 : f32 to vector<8x8xf32>
    %49 = arith.subf %47, %48 : vector<8x8xf32>
    %cst_20 = arith.constant 8.000000e+00 : f32
    %50 = vector.broadcast %cst_20 : f32 to vector<8x8xf32>
    %51 = arith.select %46, %49, %50 : vector<8x8xi1>, vector<8x8xf32>
    %cst_21 = arith.constant dense<0x7F800000> : vector<8xf32>
    %52 = vector.multi_reduction <minimumf>, %51, %cst_21 [0] : vector<8x8xf32> to vector<8xf32>
    %53 = vector.shape_cast %52 : vector<8xf32> to vector<1x8xf32>
    %54 = tpu.iota {dimensions = array<i32: 0>} : vector<8x8xi32>
    %c0_i32 = arith.constant 0 : i32
    %55 = vector.broadcast %c0_i32 : i32 to vector<8x8xi32>
    %56 = arith.cmpi eq, %54, %55 : vector<8x8xi32>
    %c1_i32_22 = arith.constant 1 : i32
    %57 = vector.broadcast %c1_i32_22 : i32 to vector<8x8xi32>
    %58 = arith.cmpi eq, %54, %57 : vector<8x8xi32>
    %c2_i32 = arith.constant 2 : i32
    %59 = vector.broadcast %c2_i32 : i32 to vector<8x8xi32>
    %60 = arith.cmpi eq, %54, %59 : vector<8x8xi32>
    %c3_i32 = arith.constant 3 : i32
    %61 = vector.broadcast %c3_i32 : i32 to vector<8x8xi32>
    %62 = arith.cmpi eq, %54, %61 : vector<8x8xi32>
    %cst_23 = arith.constant 0.000000e+00 : f32
    %63 = vector.shape_cast %53 : vector<1x8xf32> to vector<1x8xf32>
    %64 = vector.broadcast %63 : vector<1x8xf32> to vector<8x8xf32>
    %65 = vector.broadcast %cst_23 : f32 to vector<8x8xf32>
    %66 = arith.select %62, %64, %65 : vector<8x8xi1>, vector<8x8xf32>
    %67 = vector.shape_cast %44 : vector<1x8xf32> to vector<1x8xf32>
    %68 = vector.broadcast %67 : vector<1x8xf32> to vector<8x8xf32>
    %69 = arith.select %60, %68, %66 : vector<8x8xi1>, vector<8x8xf32>
    %70 = vector.shape_cast %39 : vector<1x8xf32> to vector<1x8xf32>
    %71 = vector.broadcast %70 : vector<1x8xf32> to vector<8x8xf32>
    %72 = arith.select %58, %71, %69 : vector<8x8xi1>, vector<8x8xf32>
    %73 = vector.shape_cast %37 : vector<1x8xf32> to vector<1x8xf32>
    %74 = vector.broadcast %73 : vector<1x8xf32> to vector<8x8xf32>
    %75 = arith.select %56, %74, %72 : vector<8x8xi1>, vector<8x8xf32>
    %c0_24 = arith.constant 0 : index
    %c0_25 = arith.constant 0 : index
    %76 = vector.load %arg7[%c0_24, %c0_25] : memref<8x8xf32, #tpu.memory_space<vmem>>, vector<8x8xf32>
    tpu.vector_store %arg7[%c0_24, %c0_25], %75 {strides = array<i32>} : memref<8x8xf32, #tpu.memory_space<vmem>>, vector<8x8xf32>,
    return
  }
  func.func @transform_0(%arg0: i32) -> (i32, i32) {
    %c0_i32 = arith.constant 0 : i32
    %c0_i32_0 = arith.constant 0 : i32
    return %arg0, %c0_i32 : i32, i32
  }
  func.func @transform_1(%arg0: i32) -> (i32, i32) {
    %c0_i32 = arith.constant 0 : i32
    %c0_i32_0 = arith.constant 0 : i32
    %c0_i32_1 = arith.constant 0 : i32
    return %c0_i32, %c0_i32_0 : i32, i32
  }
  func.func @transform_2(%arg0: i32) -> (i32, i32) {
    %c0_i32 = arith.constant 0 : i32
    %c0_i32_0 = arith.constant 0 : i32
    %c0_i32_1 = arith.constant 0 : i32
    return %c0_i32, %c0_i32_0 : i32, i32
  }
  func.func @transform_3(%arg0: i32) -> (i32, i32) {
    %c0_i32 = arith.constant 0 : i32
    %c0_i32_0 = arith.constant 0 : i32
    %c0_i32_1 = arith.constant 0 : i32
    return %c0_i32, %c0_i32_0 : i32, i32
  }
  func.func @transform_4(%arg0: i32) -> (i32, i32) {
    %c0_i32 = arith.constant 0 : i32
    %c0_i32_0 = arith.constant 0 : i32
    %c0_i32_1 = arith.constant 0 : i32
    return %c0_i32, %c0_i32_0 : i32, i32
  }
  func.func @transform_5(%arg0: i32) -> (i32, i32) {
    %c0_i32 = arith.constant 0 : i32
    %c0_i32_0 = arith.constant 0 : i32
    %c0_i32_1 = arith.constant 0 : i32
    return %c0_i32, %c0_i32_0 : i32, i32
  }
  func.func @transform_6(%arg0: i32) -> (i32, i32) {
    %c0_i32 = arith.constant 0 : i32
    %c0_i32_0 = arith.constant 0 : i32
    return %c0_i32, %arg0 : i32, i32
  }
}

</mosaic_0001>

<bundles_post_ra>
// kernel: tpu_custom_call.1
= control target key start
LH: loop header
LB: loop body
LE: loop exit
PB: predicated region body
PF: predicated region fallthrough
CT: control target
= control target key end

     0   :  { %11 = vsyncpa [#allocation3], 0  ;;  %s558_s0 = inlined_call_operand.vmem [shape: f32[8,32], index: 0, kind: input, shape index: {}]   ;;  %s559_s1 = inlined_call_operand.hbm [shape: bf16[32,128], index: 1, kind: input, shape index: {}]   ;;  %s560_s2 = inlined_call_operand.hbm [shape: bf16[128,128], index: 2, kind: input, shape index: {}]   ;;  %s561_s3 = inlined_call_operand.hbm [shape: bf16[8,128], index: 3, kind: input, shape index: {}]   ;;  %s562_s4 = inlined_call_operand.vmem [shape: f32[2,128], index: 4, kind: input, shape index: {}]   ;;  %s563_s5 = inlined_call_operand.vmem [shape: f32[8,1], index: 5, kind: input, shape index: {}]   ;;  %s564_s6 = inlined_call_operand.hbm [shape: f32[8,8], index: 6, kind: output, shape index: {}]  }
   0x1   :  { %12 = vsyncpa [#allocation6], 0 }
   0x2   :  { %13 = vsyncpa [#allocation4], 0  ;;  %s33_s23 = sshll.u32 %s560_s2, 4  ;;  %s474_s24 = smov [#allocation5]   ;;  %s34_s23 = int_to_ptr.hbm [resolvable:$true] %s33_s23 }
   0x3   :  { %s35_s25 = sshll.u32 %s474_s24, 4  ;;  %s20_s28 = sshll.u32 %s559_s1, 4  ;;  %s36_s25 = int_to_ptr.vmem [resolvable:$true] %s35_s25  ;;  %s21_s28 = int_to_ptr.hbm [resolvable:$true] %s20_s28 }
   0x4   :  { %s475_s29 = smov 64   ;;  %s476_s30 = smov 4  }
   0x5   :  { %41 = dma.hbm_to_vmem [thread:$0]  %s34_s23, 1024, %s36_s25, [#allocation6], %s475_s29, %s475_s29, %s476_s30  }
   0x6   :  { %s477_s7 = smov [#allocation2]   ;;  %s47_s11 = sshll.u32 %s561_s3, 4  ;;  %s48_s11 = int_to_ptr.hbm [resolvable:$true] %s47_s11 }
   0x7   :  { %s22_s8 = sshll.u32 %s477_s7, 4  ;;  %s478_s2 = smov [#allocation7]   ;;  %s23_s8 = int_to_ptr.vmem [resolvable:$true] %s22_s8 }
   0x8   :  { %28 = dma.hbm_to_vmem [thread:$0]  %s21_s28, 256, %s23_s8, [#allocation3], %s475_s29, %s475_s29, %s476_s30  }
   0x9   :  { %s49_s12 = sshll.u32 %s478_s2, 4  ;;  %s50_s12 = int_to_ptr.vmem [resolvable:$true] %s49_s12 }
   0xa   :  { %52 = dma.hbm_to_vmem [thread:$0]  %s48_s11, 64, %s50_s12, [#allocation6]  }
   0xb   :  { %468 = dma.done.wait [#allocation3], 256  }
   0xc   :  { %469 = vsyncadd [#allocation3], 4294967040 }
   0xd   :  { %470 = dma.done.wait [#allocation6], 1088  }
   0xe   :  { %471 = vsyncadd [#allocation6], 4294966208  ;;  %v343_v0 = vld [vmem:[#allocation2 + $0x8] sm:$0xff]  ;;  %v342_v2 = vld [vmem:[#allocation2] sm:$0xff]  ;;  %vm92_vm0 = vcmask 261120   ;;  %v479_v19 = vmov 0   ;;  %v210_v27 = vlaneseq }
   0xf   :  { %v351_v1 = vld [vmem:[#allocation5 + $0x38] sm:$0xff]  ;;  %102 = vmatpush.bf16.msra.mxu0 %v343_v0  ;;  %v73_v3 = vld [vmem:[%s558_s0] sm:$0xff]  ;;  %v349_v6 = vld [vmem:[#allocation5 + $0x28] sm:$0xff]  ;;  %359 = vset.pattern.permute.xlu0 %v479_v19  ;;  %vm216_vm4 = vcmask 64512   ;;  %s289_s20 = sshll.u32 %s564_s6, 4  ;;  %s290_s20 = int_to_ptr.hbm [resolvable:$true] %s289_s20 }
  0x10   :  { %176 = vmatpush.bf16.msra.mxu1 %v351_v1  ;;  %v350_v4 = vld [vmem:[#allocation5 + $0x30] sm:$0xff]  ;;  %v74_v5 = vpack.c.bf16 %v73_v3, %v73_v3  ;;  %v348_v7 = vld [vmem:[#allocation5 + $0x20] sm:$0xff]  ;;  %v347_v8 = vld [vmem:[#allocation5 + $0x18] sm:$0xff]  ;;  %v537_v28 = vshrl.u32 %v210_v27, 7 }
  0x11   :  { %v346_v9 = vld [vmem:[#allocation5 + $0x10] sm:$0xff]  ;;  %v345_v10 = vld [vmem:[#allocation5 + $0x8] sm:$0xff]  ;;  %v344_v11 = vld [vmem:[#allocation5] sm:$0xff] }
  0x12   :  { %v360_v12 = vld [vmem:[%s562_s4] ss:$0 sm:$0xff]  ;;  %v361_v20 = vld [vmem:[%s562_s4 + $0x1] ss:$0 sm:$0xff]  ;;  %v190_v26 = vld [vmem:[#allocation7] sm:$0xf]  ;;  %v262_v43 = vcvt.s32.f32 %v537_v28 }
  0x13   :  { %103 = vmatpush.bf16.msra.mxu0 %v342_v2  ;;  %v72_v18 = vld [vmem:[%s563_s5] sm:$0xff]  ;;  %vm212_vm1 = vcmp.ge.s32.totalorder %v537_v28, 1  ;;  %vm213_vm2 = vcmp.le.s32.totalorder %v537_v28, 6  ;;  %vm275_vm10 = vcmp.eq.s32.totalorder %v537_v28, 3  ;;  %vm274_vm11 = vcmp.eq.s32.totalorder %v537_v28, 2  ;;  %s480_s4 = smov [#allocation8]  }
  0x14   :  { %177 = vmatpush.bf16.msra.mxu1 %v350_v4  ;;  %194 = vperm.xlu0 %359, %v72_v18   ;;  %vm214_vm3 = vmand %vm212_vm1, %vm213_vm2  ;;  %v341_v45 = vadd.f32 -1.0, %v262_v43  ;;  %vm273_vm12 = vcmp.eq.s32.totalorder %v537_v28, 1  ;;  %s287_s5 = sshll.u32 %s480_s4, 4  ;;  %vm272_vm13 = vcmp.eq.s32.totalorder %v537_v28, 0  ;;  %s288_s5 = int_to_ptr.vmem [resolvable:$true] %s287_s5 }
  0x16   :  { %308 = vmatmul.msk.bf16.vlgmr.msra.gmra.mxu0 %vm92_vm0, %v74_v5 }
  0x18   :  { %178 = vmatpush.bf16.msra.mxu1 %v349_v6 }
  0x1c   :  { %179 = vmatpush.bf16.msra.mxu1 %v348_v7 }
  0x20   :  { %180 = vmatpush.bf16.msra.mxu1 %v347_v8 }
  0x24   :  { %181 = vmatpush.bf16.msra.mxu1 %v346_v9 }
  0x28   :  { %182 = vmatpush.bf16.msra.mxu1 %v345_v10 }
  0x2c   :  { %183 = vmatpush.bf16.msra.mxu1 %v344_v11 }
  0x86   :  { %v195_v29 = vpop.permute.xlu0 %194 }
  0x93   :  { %v105_v13 = vpop.f32.mrf.mxu0 }
  0x94   :  { %v106_v14 = vadd.f32 %v360_v12, %v105_v13 }
  0x96   :  { %362 = vtanh.f32 %v106_v14 }
  0x9b   :  { %v107_v15 = vpop.f32.mrf.mxu0 }
  0x9c   :  { %v363_v16 = vpop.eup %362 }
  0x9d   :  { %v110_v17 = vpack.c.bf16 %v363_v16, %v363_v16 }
  0x9f   :  { %184 = vmatmul.bf16.vlgmr.msra.gmra.mxu1 %v110_v17 }
 0x11c   :  { %v185_v21 = vpop.f32.mrf.mxu1 }
 0x11d   :  { %v186_v22 = vadd.f32 %v361_v20, %v185_v21 }
 0x11f   :  { %364 = vtanh.f32 %v186_v22 }
 0x124   :  { %v187_v23 = vpop.f32.mrf.mxu1 }
 0x125   :  { %v365_v24 = vpop.eup %364 }
 0x126   :  { %v191_v25 = vpack.c.bf16 %v365_v24, %v365_v24 }
 0x128   :  { %204 = vmatpush.bf16.xpose.msra.mxu2 %v191_v25 }
 0x12f   :  { %205 = vmatmul.bf16.vlgmr.msra.gmra.mxu2 %v190_v26 }
 0x1b2   :  { %v206_v30 = vpop.f32.mrf.mxu2 }
 0x1b3   :  { %v541_v31 = vadd.f32 %v206_v30, %v195_v29 }
 0x1b5   :  { %v215_v32 = vsel %vm214_vm3, %v541_v31, -1e+30  ;;  %v279_v21 = vperm.slane %v541_v31, 0 }
 0x1b6   :  { %v217_v33 = vsel %vm216_vm4, %v215_v32, -inf }
 0x1b7   :  { %v218_v34 = vrot.slane %v217_v33, 4 }
 0x1b9   :  { %v219_v35 = vmax.f32 %v217_v33, %v218_v34 }
 0x1ba   :  { %v208_v36 = vpop.f32.mrf.mxu2 }
 0x1bb   :  { %v220_v37 = vrot.slane %v219_v35, 2 }
 0x1bd   :  { %v221_v38 = vmax.f32 %v219_v35, %v220_v37 }
 0x1bf   :  { %v222_v39 = vrot.slane %v221_v38, 1 }
 0x1c1   :  { %v223_v40 = vmax.f32 %v221_v38, %v222_v39 }
 0x1c3   :  { %v224_v41 = vsub.f32 %v215_v32, %v223_v40  ;;  %vm261_vm5 = vcmp.ge.f32.partialorder %v215_v32, %v223_v40 }
 0x1c4   :  { %v264_v50 = vsel %vm261_vm5, %v341_v45, 8.0 }
 0x1c5   :  { %v225_v42 = vmul.f32 1.442695, %v224_v41  ;;  %v265_v53 = vsel %vm216_vm4, %v264_v50, inf }
 0x1c6   :  { %v266_v57 = vrot.slane %v265_v53, 4 }
 0x1c7   :  { %366 = vpow2.f32 %v225_v42 }
 0x1c8   :  { %v267_v60 = vmin.f32 %v265_v53, %v266_v57 }
 0x1ca   :  { %v268_v62 = vrot.slane %v267_v60, 2 }
 0x1cc   :  { %v269_v2 = vmin.f32 %v267_v60, %v268_v62 }
 0x1cd   :  { %v367_v44 = vpop.eup %366 }
 0x1ce   :  { %v227_v46 = vsel %vm216_vm4, %v367_v44, 0.0  ;;  %v237_v48 = vmul.f32 %v367_v44, %v224_v41  ;;  %v270_v8 = vrot.slane %v269_v2, 1 }
 0x1cf   :  { %v228_v47 = vrot.slane %v227_v46, 4 }
 0x1d0   :  { %v238_v52 = vsel %vm216_vm4, %v237_v48, 0.0  ;;  %v271_v15 = vmin.f32 %v269_v2, %v270_v8 }
 0x1d1   :  { %v229_v49 = vadd.f32 %v228_v47, %v227_v46  ;;  %v239_v55 = vrot.slane %v238_v52, 4 }
 0x1d2   :  { %v276_v20 = vsel %vm275_vm10, %v271_v15, 0.0 }
 0x1d3   :  { %v230_v51 = vrot.slane %v229_v49, 2  ;;  %v240_v59 = vadd.f32 %v239_v55, %v238_v52 }
 0x1d5   :  { %v231_v54 = vadd.f32 %v230_v51, %v229_v49  ;;  %v241_v61 = vrot.slane %v240_v59, 2 }
 0x1d7   :  { %v232_v56 = vrot.slane %v231_v54, 1  ;;  %v242_v0 = vadd.f32 %v241_v61, %v240_v59 }
 0x1d9   :  { %v233_v58 = vadd.f32 %v232_v56, %v231_v54  ;;  %v243_v5 = vrot.slane %v242_v0, 1 }
 0x1db   :  { %368 = vrcp.f32 %v233_v58  ;;  %v256_v4 = vand.u32 2147483648, %v233_v58  ;;  %v254_v7 = vand.u32 2147483647, %v233_v58  ;;  %vm250_vm7 = vweird.f32 %v233_v58 }
 0x1dc   :  { %370 = vlog2.f32 %v233_v58  ;;  %v244_v12 = vadd.f32 %v243_v5, %v242_v0 }
 0x1dd   :  { %v257_v11 = vor.u32 1.1754944e-38, %v256_v4  ;;  %vm255_vm9 = vcmp.eq.f32.partialorder %v254_v7, 8.507059e+37 }
 0x1e1   :  { %v369_v63 = vpop.eup %368 }
 0x1e2   :  { %v246_v1 = vmul.f32 %v369_v63, %v233_v58  ;;  %vm251_vm6 = vweird.f32 %v369_v63  ;;  %v371_v9 = vpop.eup %370 }
 0x1e3   :  { %vm252_vm8 = vmor %vm250_vm7, %vm251_vm6  ;;  %v235_v16 = vmul.f32 0.6931472, %v371_v9 }
 0x1e4   :  { %v247_v3 = vsub.f32 1.0, %v246_v1 }
 0x1e5   :  { %v236_v19 = vsub.f32 0.0, %v235_v16 }
 0x1e6   :  { %v248_v6 = vmul.f32 %v369_v63, %v247_v3 }
 0x1e8   :  { %v249_v10 = vadd.f32 %v369_v63, %v248_v6 }
 0x1ea   :  { %v253_v13 = vsel %vm252_vm8, %v369_v63, %v249_v10 }
 0x1eb   :  { %v258_v14 = vsel %vm255_vm9, %v257_v11, %v253_v13 }
 0x1ec   :  { %v259_v17 = vmul.f32 %v258_v14, %v244_v12 }
 0x1ee   :  { %v260_v18 = vsub.f32 %v235_v16, %v259_v17 }
 0x1f0   :  { %v277_v22 = vsel %vm274_vm11, %v260_v18, %v276_v20 }
 0x1f1   :  { %v278_v23 = vsel %vm273_vm12, %v236_v19, %v277_v22 }
 0x1f2   :  { %v280_v24 = vsel %vm272_vm13, %v279_v21, %v278_v23 }
 0x1f3   :  { %281 = vst.msk [vmem:[#allocation8] sm:$0xff] %vm216_vm4, %v280_v24 }
 0x1f4   :  { %292 = dma.vmem_to_hbm [thread:$0]  %s288_s5, 128, %s290_s20, [#allocation4]  }
 0x1f5   :  { %472 = dma.done.wait [#allocation4], 128  }
 0x1f6   :  { %473 = vsyncadd [#allocation4], 4294967168 }
 0x1f7   :  { %297 = vsyncpa [#allocation3], 1 }
 0x1f8   :  { %298 = vsyncpa [#allocation6], 1 }
 0x1f9   :  { %299 = vsyncpa [#allocation4], 1 }

</bundles_post_ra>
